<compile_context>
chip_gen: v7x
topology: tpu7x:2x2x1
jax: 0.10.0
libtpu: 0.0.40
codegen_flags: <defaults>
</compile_context>

<pallas_src>
import math

import jax
import jax.numpy as jnp
from jax.experimental import pallas as pl
from jax.experimental.pallas import tpu as pltpu

ACTION_PAD = 128  # lane-dense width for the action-head output


def _round_up(n, m):
    return ((n + m - 1) // m) * m


def _use_bf16_activations():
    """bf16 EUP/VPU exists on v6e/v7x; keep the f32 path on v5e and older."""
    try:
        kind = jax.devices()[0].device_kind.lower()
    except Exception:
        return False
    return ("v6" in kind) or ("v7" in kind) or ("tpu7" in kind)


def _choose_batch_tile(B):
    """Batch rows per grid step."""
    if B <= 256:
        return B  # single full-extent block (bypasses the 8-row divisibility rule)
    # Aim for >= 2 blocks (dual-TC v7x) with tiles a multiple of 256 rows,
    # capped at 1024 rows (~0.7 MiB of activations per tile).
    tb = _round_up(-(-B // 2), 256)
    return min(tb, 1024)


def make_policy_kernel(act_dtype):
    """3 tanh-Linear layers + (lane-padded) action head for one batch tile.

    Weights are bf16 (in, out); matmuls accumulate in f32 on the MXU.
    tanh runs in `act_dtype` (bf16 on v6e/v7x, f32 on v5e).
    """

    def policy_kernel(x_ref,
                      w1_ref, b1_ref,
                      w2_ref, b2_ref,
                      w3_ref, b3_ref,
                      wm_ref, bm_ref,
                      mean_ref):
        def hidden_layer(h_bf16, w_ref, b_ref):
            pre = (jnp.dot(h_bf16, w_ref[...],
                           preferred_element_type=jnp.float32) + b_ref[...])
            return jnp.tanh(pre.astype(act_dtype)).astype(jnp.bfloat16)

        h = x_ref[...].astype(jnp.bfloat16)
        h = hidden_layer(h, w1_ref, b1_ref)
        h = hidden_layer(h, w2_ref, b2_ref)
        h = hidden_layer(h, w3_ref, b3_ref)
        mean = (jnp.dot(h, wm_ref[...],
                        preferred_element_type=jnp.float32) + bm_ref[...])
        mean_ref[...] = mean.astype(mean_ref.dtype)

    return policy_kernel


def policy_forward(x, params):
    """params = (w1, b1, w2, b2, w3, b3, wm_pad, bm_pad, action_log_std).

    Returns (action_mean, action_log_std, action_std), matching Policy.forward.
    """
    w1, b1, w2, b2, w3, b3, wm_p, bm_p, log_std = params
    B, state_dim = x.shape
    action_dim = log_std.shape[-1]
    assert wm_p.shape[-1] == ACTION_PAD and bm_p.shape[-1] == ACTION_PAD, (
        "action-head weight/bias must be pre-padded to ACTION_PAD output "
        "lanes (see init_policy_params)")
    h1, h2, h3 = w1.shape[1], w2.shape[1], w3.shape[1]

    TB = _choose_batch_tile(B)
    num_blocks = pl.cdiv(B, TB)  # ragged last block handled by Pallas (no jnp.pad)

    act_dtype = jnp.bfloat16 if _use_bf16_activations() else jnp.float32

    # Weights/biases: constant block index -> fetched once, VMEM-resident.
    weight_specs = [
        pl.BlockSpec(w1.shape, lambda i: (0, 0)),
        pl.BlockSpec(b1.shape, lambda i: (0, 0)),
        pl.BlockSpec(w2.shape, lambda i: (0, 0)),
        pl.BlockSpec(b2.shape, lambda i: (0, 0)),
        pl.BlockSpec(w3.shape, lambda i: (0, 0)),
        pl.BlockSpec(b3.shape, lambda i: (0, 0)),
        pl.BlockSpec(wm_p.shape, lambda i: (0, 0)),
        pl.BlockSpec(bm_p.shape, lambda i: (0, 0)),
    ]

    flops = 2 * B * (state_dim * h1 + h1 * h2 + h2 * h3 + h3 * ACTION_PAD)
    transcendentals = B * (h1 + h2 + h3)
    bytes_accessed = (
        x.size * x.dtype.itemsize
        + sum(p.size * p.dtype.itemsize
              for p in (w1, b1, w2, b2, w3, b3, wm_p, bm_p))
        + B * ACTION_PAD * 4
    )

    mean_pad = pl.pallas_call(
        make_policy_kernel(act_dtype),
        out_shape=jax.ShapeDtypeStruct((B, ACTION_PAD), jnp.float32),
        grid=(num_blocks,),
        in_specs=[pl.BlockSpec((TB, state_dim), lambda i: (i, 0))] + weight_specs,
        out_specs=pl.BlockSpec((TB, ACTION_PAD), lambda i: (i, 0)),
        compiler_params=pltpu.CompilerParams(
            dimension_semantics=("parallel",)),
        cost_estimate=pl.CostEstimate(
            flops=flops,
            transcendentals=transcendentals,
            bytes_accessed=bytes_accessed),
    )(x, w1, b1, w2, b2, w3, b3, wm_p, bm_p)

    action_mean = mean_pad[:, :action_dim]

    # Constants w.r.t. x: computed once in plain JAX (no kernel DMA traffic).
    action_log_std = jnp.broadcast_to(log_std, action_mean.shape)
    action_std = jnp.exp(action_log_std)
    return action_mean, action_log_std, action_std


def init_policy_params(key, state_dim, action_dim,
                       hidden_size=(128, 256, 128), log_std=0.0):
    """Init mimicking torch.nn.Linear defaults (uniform +-1/sqrt(fan_in)).

    Weights are stored as (in, out) bf16 for the MXU (transposed vs. PyTorch).
    The action head weight/bias are zero-padded to ACTION_PAD output lanes so
    the kernel's final store is lane-dense; biases stay f32.
    """
    params = []
    last_dim = state_dim
    dims = list(hidden_size) + [action_dim]
    for li, nh in enumerate(dims):
        key, kw, kb = jax.random.split(key, 3)
        bound = 1.0 / math.sqrt(last_dim)
        w = jax.random.uniform(kw, (last_dim, nh), jnp.float32, -bound, bound)
        b = jax.random.uniform(kb, (1, nh), jnp.float32, -bound, bound)
        if li == len(dims) - 1:  # action head: pad output lanes to ACTION_PAD
            w = jnp.pad(w, ((0, 0), (0, ACTION_PAD - nh)))
            b = jnp.pad(b, ((0, 0), (0, ACTION_PAD - nh)))
        params.extend([w.astype(jnp.bfloat16), b.astype(jnp.float32)])
        last_dim = nh
    action_log_std = jnp.ones((1, action_dim), jnp.float32) * log_std
    params.append(action_log_std)
    return tuple(params)


def policy_forward_ref(x, params):
    """Pure-JAX reference (same bf16 matmul boundaries; f32 tanh)."""
    w1, b1, w2, b2, w3, b3, wm_p, bm_p, log_std = params
    action_dim = log_std.shape[-1]

    def lin(h, w, b):
        return jnp.dot(h.astype(jnp.bfloat16), w,
                       preferred_element_type=jnp.float32) + b

    h = jnp.tanh(lin(x, w1, b1))
    h = jnp.tanh(lin(h, w2, b2))
    h = jnp.tanh(lin(h, w3, b3))
    mean = lin(h, wm_p, bm_p)[:, :action_dim]
    log_std_b = jnp.broadcast_to(log_std, mean.shape)
    return mean, log_std_b, jnp.exp(log_std_b)


if __name__ == "__main__":
    key = jax.random.PRNGKey(0)
    B, state_dim, action_dim = 8, 32, 8

    key, kx = jax.random.split(key)
    x = jax.random.normal(kx, (B, state_dim), jnp.float32)

    params = init_policy_params(key, state_dim, action_dim,
                                hidden_size=(128, 256, 128), log_std=0.0)

    mean, log_std, std = policy_forward(x, params)
    jax.block_until_ready((mean, log_std, std))

    # sanity check against pure-JAX reference (tolerance covers bf16 tanh path)
    mean_r, log_std_r, std_r = policy_forward_ref(x, params)
    assert mean.shape == (B, action_dim)
    assert jnp.allclose(mean, mean_r, atol=3e-2, rtol=3e-2)
    assert jnp.allclose(log_std, log_std_r, atol=1e-6)
    assert jnp.allclose(std, std_r, atol=1e-6)

    print("KERNEL_OK")
</pallas_src>

<mosaic_0001>
module attributes {stable_mosaic.version = 11 : i64} {
  func.func @policy_kernel(%arg0: i32, %arg1: memref<8x32xf32, #tpu.memory_space<vmem>>, %arg2: memref<32x128xbf16, #tpu.memory_space<vmem>>, %arg3: memref<1x128xf32, #tpu.memory_space<vmem>>, %arg4: memref<128x256xbf16, #tpu.memory_space<vmem>>, %arg5: memref<1x256xf32, #tpu.memory_space<vmem>>, %arg6: memref<256x128xbf16, #tpu.memory_space<vmem>>, %arg7: memref<1x128xf32, #tpu.memory_space<vmem>>, %arg8: memref<128x128xbf16, #tpu.memory_space<vmem>>, %arg9: memref<1x128xf32, #tpu.memory_space<vmem>>, %arg10: memref<8x128xf32, #tpu.memory_space<vmem>>) attributes {dimension_semantics = [#tpu.dimension_semantics<parallel>], iteration_bounds = array<i64: 1>, scalar_prefetch = 0 : i64, scratch_operands = 0 : i64, tpu.core_type = #tpu.core_type<tc>, window_params = [{transform_indices = @transform_0, window_bounds = array<i64: 8, 32>}, {pipeline_mode = #tpu.pipeline_mode<synchronous>, transform_indices = @transform_1, window_bounds = array<i64: 32, 128>}, {pipeline_mode = #tpu.pipeline_mode<synchronous>, transform_indices = @transform_2, window_bounds = array<i64: 1, 128>}, {pipeline_mode = #tpu.pipeline_mode<synchronous>, transform_indices = @transform_3, window_bounds = array<i64: 128, 256>}, {pipeline_mode = #tpu.pipeline_mode<synchronous>, transform_indices = @transform_4, window_bounds = array<i64: 1, 256>}, {pipeline_mode = #tpu.pipeline_mode<synchronous>, transform_indices = @transform_5, window_bounds = array<i64: 256, 128>}, {pipeline_mode = #tpu.pipeline_mode<synchronous>, transform_indices = @transform_6, window_bounds = array<i64: 1, 128>}, {pipeline_mode = #tpu.pipeline_mode<synchronous>, transform_indices = @transform_7, window_bounds = array<i64: 128, 128>}, {pipeline_mode = #tpu.pipeline_mode<synchronous>, transform_indices = @transform_8, window_bounds = array<i64: 1, 128>}, {transform_indices = @transform_9, window_bounds = array<i64: 8, 128>}]} {
    %c0 = arith.constant 0 : index
    %c0_0 = arith.constant 0 : index
    %0 = vector.load %arg1[%c0, %c0_0] : memref<8x32xf32, #tpu.memory_space<vmem>>, vector<8x32xf32>
    %1 = arith.truncf %0 : vector<8x32xf32> to vector<8x32xbf16>
    %c0_1 = arith.constant 0 : index
    %c0_2 = arith.constant 0 : index
    %2 = vector.load %arg2[%c0_1, %c0_2] : memref<32x128xbf16, #tpu.memory_space<vmem>>, vector<32x128xbf16>
    %cst = arith.constant dense<0.000000e+00> : vector<8x128xf32>
    %3 = tpu.matmul %1, %2, %cst {dimension_numbers = #tpu.dot_dimension_numbers<[1], [0], [0], [1], [0, 0, 1, 1], [], []>} : vector<8x32xbf16>, vector<32x128xbf16>, vector<8x128xf32> -> vector<8x128xf32>
    %c0_3 = arith.constant 0 : index
    %c0_4 = arith.constant 0 : index
    %4 = vector.load %arg3[%c0_3, %c0_4] : memref<1x128xf32, #tpu.memory_space<vmem>>, vector<1x128xf32>
    %5 = vector.broadcast %4 : vector<1x128xf32> to vector<8x128xf32>
    %6 = arith.addf %3, %5 : vector<8x128xf32>
    %7 = math.tanh %6 : vector<8x128xf32>
    %8 = arith.truncf %7 : vector<8x128xf32> to vector<8x128xbf16>
    %c0_5 = arith.constant 0 : index
    %c0_6 = arith.constant 0 : index
    %9 = vector.load %arg4[%c0_5, %c0_6] : memref<128x256xbf16, #tpu.memory_space<vmem>>, vector<128x256xbf16>
    %cst_7 = arith.constant dense<0.000000e+00> : vector<8x256xf32>
    %10 = tpu.matmul %8, %9, %cst_7 {dimension_numbers = #tpu.dot_dimension_numbers<[1], [0], [0], [1], [0, 0, 1, 1], [], []>} : vector<8x128xbf16>, vector<128x256xbf16>, vector<8x256xf32> -> vector<8x256xf32>
    %c0_8 = arith.constant 0 : index
    %c0_9 = arith.constant 0 : index
    %11 = vector.load %arg5[%c0_8, %c0_9] : memref<1x256xf32, #tpu.memory_space<vmem>>, vector<1x256xf32>
    %12 = vector.broadcast %11 : vector<1x256xf32> to vector<8x256xf32>
    %13 = arith.addf %10, %12 : vector<8x256xf32>
    %14 = math.tanh %13 : vector<8x256xf32>
    %15 = arith.truncf %14 : vector<8x256xf32> to vector<8x256xbf16>
    %c0_10 = arith.constant 0 : index
    %c0_11 = arith.constant 0 : index
    %16 = vector.load %arg6[%c0_10, %c0_11] : memref<256x128xbf16, #tpu.memory_space<vmem>>, vector<256x128xbf16>
    %cst_12 = arith.constant dense<0.000000e+00> : vector<8x128xf32>
    %17 = tpu.matmul %15, %16, %cst_12 {dimension_numbers = #tpu.dot_dimension_numbers<[1], [0], [0], [1], [0, 0, 1, 1], [], []>} : vector<8x256xbf16>, vector<256x128xbf16>, vector<8x128xf32> -> vector<8x128xf32>
    %c0_13 = arith.constant 0 : index
    %c0_14 = arith.constant 0 : index
    %18 = vector.load %arg7[%c0_13, %c0_14] : memref<1x128xf32, #tpu.memory_space<vmem>>, vector<1x128xf32>
    %19 = vector.broadcast %18 : vector<1x128xf32> to vector<8x128xf32>
    %20 = arith.addf %17, %19 : vector<8x128xf32>
    %21 = math.tanh %20 : vector<8x128xf32>
    %22 = arith.truncf %21 : vector<8x128xf32> to vector<8x128xbf16>
    %c0_15 = arith.constant 0 : index
    %c0_16 = arith.constant 0 : index
    %23 = vector.load %arg8[%c0_15, %c0_16] : memref<128x128xbf16, #tpu.memory_space<vmem>>, vector<128x128xbf16>
    %cst_17 = arith.constant dense<0.000000e+00> : vector<8x128xf32>
    %24 = tpu.matmul %22, %23, %cst_17 {dimension_numbers = #tpu.dot_dimension_numbers<[1], [0], [0], [1], [0, 0, 1, 1], [], []>} : vector<8x128xbf16>, vector<128x128xbf16>, vector<8x128xf32> -> vector<8x128xf32>
    %c0_18 = arith.constant 0 : index
    %c0_19 = arith.constant 0 : index
    %25 = vector.load %arg9[%c0_18, %c0_19] : memref<1x128xf32, #tpu.memory_space<vmem>>, vector<1x128xf32>
    %26 = vector.broadcast %25 : vector<1x128xf32> to vector<8x128xf32>
    %27 = arith.addf %24, %26 : vector<8x128xf32>
    %c0_20 = arith.constant 0 : index
    %c0_21 = arith.constant 0 : index
    %28 = vector.load %arg10[%c0_20, %c0_21] : memref<8x128xf32, #tpu.memory_space<vmem>>, vector<8x128xf32>
    tpu.vector_store %arg10[%c0_20, %c0_21], %27 {strides = array<i32>} : memref<8x128xf32, #tpu.memory_space<vmem>>, vector<8x128xf32>,
    return
  }
  func.func @transform_0(%arg0: i32) -> (i32, i32) {
    %c0_i32 = arith.constant 0 : i32
    %c0_i32_0 = arith.constant 0 : i32
    return %arg0, %c0_i32 : i32, i32
  }
  func.func @transform_1(%arg0: i32) -> (i32, i32) {
    %c0_i32 = arith.constant 0 : i32
    %c0_i32_0 = arith.constant 0 : i32
    %c0_i32_1 = arith.constant 0 : i32
    return %c0_i32, %c0_i32_0 : i32, i32
  }
  func.func @transform_2(%arg0: i32) -> (i32, i32) {
    %c0_i32 = arith.constant 0 : i32
    %c0_i32_0 = arith.constant 0 : i32
    %c0_i32_1 = arith.constant 0 : i32
    return %c0_i32, %c0_i32_0 : i32, i32
  }
  func.func @transform_3(%arg0: i32) -> (i32, i32) {
    %c0_i32 = arith.constant 0 : i32
    %c0_i32_0 = arith.constant 0 : i32
    %c0_i32_1 = arith.constant 0 : i32
    return %c0_i32, %c0_i32_0 : i32, i32
  }
  func.func @transform_4(%arg0: i32) -> (i32, i32) {
    %c0_i32 = arith.constant 0 : i32
    %c0_i32_0 = arith.constant 0 : i32
    %c0_i32_1 = arith.constant 0 : i32
    return %c0_i32, %c0_i32_0 : i32, i32
  }
  func.func @transform_5(%arg0: i32) -> (i32, i32) {
    %c0_i32 = arith.constant 0 : i32
    %c0_i32_0 = arith.constant 0 : i32
    %c0_i32_1 = arith.constant 0 : i32
    return %c0_i32, %c0_i32_0 : i32, i32
  }
  func.func @transform_6(%arg0: i32) -> (i32, i32) {
    %c0_i32 = arith.constant 0 : i32
    %c0_i32_0 = arith.constant 0 : i32
    %c0_i32_1 = arith.constant 0 : i32
    return %c0_i32, %c0_i32_0 : i32, i32
  }
  func.func @transform_7(%arg0: i32) -> (i32, i32) {
    %c0_i32 = arith.constant 0 : i32
    %c0_i32_0 = arith.constant 0 : i32
    %c0_i32_1 = arith.constant 0 : i32
    return %c0_i32, %c0_i32_0 : i32, i32
  }
  func.func @transform_8(%arg0: i32) -> (i32, i32) {
    %c0_i32 = arith.constant 0 : i32
    %c0_i32_0 = arith.constant 0 : i32
    %c0_i32_1 = arith.constant 0 : i32
    return %c0_i32, %c0_i32_0 : i32, i32
  }
  func.func @transform_9(%arg0: i32) -> (i32, i32) {
    %c0_i32 = arith.constant 0 : i32
    %c0_i32_0 = arith.constant 0 : i32
    return %arg0, %c0_i32 : i32, i32
  }
}

</mosaic_0001>

<bundles_post_ra>
// kernel: tpu_custom_call.1
= control target key start
LH: loop header
LB: loop body
LE: loop exit
PB: predicated region body
PF: predicated region fallthrough
CT: control target
= control target key end

     0   :  { %14 = vsyncpa [#allocation3], 0  ;;  %s1119_s0 = inlined_call_operand.hbm [shape: f32[8,32], index: 0, kind: input, shape index: {}]   ;;  %s1120_s1 = inlined_call_operand.hbm [shape: bf16[32,128], index: 1, kind: input, shape index: {}]   ;;  %s1121_s2 = inlined_call_operand.vmem [shape: f32[1,128], index: 2, kind: input, shape index: {}]   ;;  %s1122_s3 = inlined_call_operand.hbm [shape: bf16[128,256], index: 3, kind: input, shape index: {}]   ;;  %s1123_s4 = inlined_call_operand.vmem [shape: f32[1,256], index: 4, kind: input, shape index: {}]   ;;  %s1124_s5 = inlined_call_operand.hbm [shape: bf16[256,128], index: 5, kind: input, shape index: {}]   ;;  %s1125_s6 = inlined_call_operand.vmem [shape: f32[1,128], index: 6, kind: input, shape index: {}]   ;;  %s1126_s7 = inlined_call_operand.hbm [shape: bf16[128,128], index: 7, kind: input, shape index: {}]   ;;  %s1127_s8 = inlined_call_operand.vmem [shape: f32[1,128], index: 8, kind: input, shape index: {}]   ;;  %s1128_s9 = inlined_call_operand.hbm [shape: f32[8,128], index: 9, kind: output, shape index: {}]  }
   0x1   :  { %15 = vsyncpa [#allocation6], 0 }
   0x2   :  { %16 = vsyncpa [#allocation9], 0 }
   0x3   :  { %17 = vsyncpa [#allocation4], 0  ;;  %s949_s30 = smov [#allocation5]   ;;  %s809_s13 = scalar_lea.hbm %s1120_s1, 256 }
   0x4   :  { %s33_s10 = sshll.u32 %s949_s30, 4  ;;  %p810_p0 = scmp.ne.s32.totalorder %s1120_s1, %s809_s13  ;;  %s34_s10 = int_to_ptr.vmem [resolvable:$true] %s33_s10 }
   0x5   :  { %p813_p1 = scmp.lt.u32.totalorder %s809_s13, %s1120_s1 }
   0x7   :  { %p815_p2 = pnand %p813_p1, %p810_p0 }
   0x9   :  { %818 = shalt.err (!%p815_p2)
}
   0xa   :  { %s819_s18 = scalar_lea.vmem %s34_s10, 256  ;;  %p824_p4 = scmp.lt.s32.totalorder %s34_s10, %s34_s10 }
   0xb   :  { %p820_p3 = scmp.ne.s32.totalorder %s34_s10, %s819_s18  ;;  %p825_p5 = scmp.lt.s32.totalorder %s819_s18, %s819_s18 }
   0xd   :  { %p826_p6 = por %p825_p5, %p824_p4 }
   0xf   :  { %p827_p7 = pnand %p826_p6, %p820_p3 }
  0x11   :  { %830 = shalt.err (!%p827_p7)
}
  0x12   :  { %s950_s19 = smov 64   ;;  %s951_s20 = smov 4  }
  0x13   :  { %39 = dma.hbm_to_vmem [thread:$0]  %s1120_s1, 256, %s34_s10, [#allocation6], %s950_s19, %s950_s19, %s951_s20  }
  0x14   :  { %s952_s23 = smov [#allocation8]   ;;  %s953_s25 = smov [#allocation2]  }
  0x15   :  { %s61_s24 = sshll.u32 %s952_s23, 4  ;;  %s24_s26 = sshll.u32 %s953_s25, 4  ;;  %s62_s24 = int_to_ptr.vmem [resolvable:$true] %s61_s24  ;;  %s25_s26 = int_to_ptr.vmem [resolvable:$true] %s24_s26 }
  0x16   :  { %s831_s29 = scalar_lea.hbm %s1124_s5, 2048 }
  0x17   :  { %p832_p8 = scmp.ne.s32.totalorder %s1124_s5, %s831_s29  ;;  %p835_p9 = scmp.lt.u32.totalorder %s831_s29, %s1124_s5 }
  0x19   :  { %p837_p10 = pnand %p835_p9, %p832_p8 }
  0x1b   :  { %840 = shalt.err (!%p837_p10)
}
  0x1c   :  { %s841_s1 = scalar_lea.vmem %s62_s24, 2048  ;;  %p846_p12 = scmp.lt.s32.totalorder %s62_s24, %s62_s24 }
  0x1d   :  { %p842_p11 = scmp.ne.s32.totalorder %s62_s24, %s841_s1  ;;  %p847_p13 = scmp.lt.s32.totalorder %s841_s1, %s841_s1 }
  0x1f   :  { %p848_p0 = por %p847_p13, %p846_p12 }
  0x21   :  { %p849_p1 = pnand %p848_p0, %p842_p11 }
  0x23   :  { %852 = shalt.err (!%p849_p1)
}
  0x24   :  { %67 = dma.hbm_to_vmem [thread:$0]  %s1124_s5, 2048, %s62_s24, [#allocation9], %s950_s19, %s950_s19, %s951_s20  }
  0x25   :  { %s853_s17 = scalar_lea.hbm %s1119_s0, 128 }
  0x26   :  { %p854_p2 = scmp.ne.s32.totalorder %s1119_s0, %s853_s17  ;;  %p857_p3 = scmp.lt.u32.totalorder %s853_s17, %s1119_s0 }
  0x28   :  { %p859_p4 = pnand %p857_p3, %p854_p2 }
  0x2a   :  { %862 = shalt.err (!%p859_p4)
}
  0x2b   :  { %s863_s25 = scalar_lea.vmem %s25_s26, 128  ;;  %p868_p6 = scmp.lt.s32.totalorder %s25_s26, %s25_s26 }
  0x2c   :  { %p864_p5 = scmp.ne.s32.totalorder %s25_s26, %s863_s25  ;;  %p869_p7 = scmp.lt.s32.totalorder %s863_s25, %s863_s25 }
  0x2e   :  { %p870_p8 = por %p869_p7, %p868_p6 }
  0x30   :  { %p871_p9 = pnand %p870_p8, %p864_p5 }
  0x32   :  { %874 = shalt.err (!%p871_p9)
}
  0x33   :  { %27 = dma.hbm_to_vmem [thread:$0]  %s1119_s0, 128, %s25_s26, [#allocation3]  }
  0x34   :  { %s954_s27 = smov [#allocation7]   ;;  %s875_s11 = scalar_lea.hbm %s1122_s3, 2048 }
  0x35   :  { %s47_s28 = sshll.u32 %s954_s27, 4  ;;  %p876_p10 = scmp.ne.s32.totalorder %s1122_s3, %s875_s11  ;;  %s48_s28 = int_to_ptr.vmem [resolvable:$true] %s47_s28 }
  0x36   :  { %p879_p11 = scmp.lt.u32.totalorder %s875_s11, %s1122_s3 }
  0x38   :  { %p881_p12 = pnand %p879_p11, %p876_p10 }
  0x3a   :  { %884 = shalt.err (!%p881_p12)
}
  0x3b   :  { %s885_s14 = scalar_lea.vmem %s48_s28, 2048  ;;  %p890_p0 = scmp.lt.s32.totalorder %s48_s28, %s48_s28 }
  0x3c   :  { %p886_p13 = scmp.ne.s32.totalorder %s48_s28, %s885_s14  ;;  %p891_p1 = scmp.lt.s32.totalorder %s885_s14, %s885_s14 }
  0x3e   :  { %p892_p2 = por %p891_p1, %p890_p0 }
  0x40   :  { %p893_p3 = pnand %p892_p2, %p886_p13 }
  0x42   :  { %896 = shalt.err (!%p893_p3)
}
  0x43   :  { %s955_s0 = smov 128   ;;  %s956_s26 = smov 8  }
  0x44   :  { %53 = dma.hbm_to_vmem [thread:$0]  %s1122_s3, 2048, %s48_s28, [#allocation6], %s955_s0, %s955_s0, %s956_s26  }
  0x45   :  { %s957_s17 = smov [#allocation10]   ;;  %s897_s23 = scalar_lea.hbm %s1126_s7, 1024 }
  0x46   :  { %s75_s18 = sshll.u32 %s957_s17, 4  ;;  %p898_p4 = scmp.ne.s32.totalorder %s1126_s7, %s897_s23  ;;  %s76_s18 = int_to_ptr.vmem [resolvable:$true] %s75_s18 }
  0x47   :  { %p901_p5 = scmp.lt.u32.totalorder %s897_s23, %s1126_s7 }
  0x49   :  { %p903_p6 = pnand %p901_p5, %p898_p4 }
  0x4b   :  { %906 = shalt.err (!%p903_p6)
}
  0x4c   :  { %s907_s29 = scalar_lea.vmem %s76_s18, 1024  ;;  %p912_p8 = scmp.lt.s32.totalorder %s76_s18, %s76_s18 }
  0x4d   :  { %p908_p7 = scmp.ne.s32.totalorder %s76_s18, %s907_s29  ;;  %p913_p9 = scmp.lt.s32.totalorder %s907_s29, %s907_s29 }
  0x4f   :  { %p914_p10 = por %p913_p9, %p912_p8 }
  0x51   :  { %p915_p11 = pnand %p914_p10, %p908_p7 }
  0x53   :  { %918 = shalt.err (!%p915_p11)
}
  0x54   :  { %81 = dma.hbm_to_vmem [thread:$0]  %s1126_s7, 1024, %s76_s18, [#allocation9], %s950_s19, %s950_s19, %s951_s20  }
  0x55   :  { %941 = dma.done.wait [#allocation3], 128  }
  0x56   :  { %942 = vsyncadd [#allocation3], 4294967168 }
  0x57   :  { %943 = dma.done.wait [#allocation6], 2304  }
  0x58   :  { %944 = vsyncadd [#allocation6], 4294964992 }
  0x59   :  { %945 = dma.done.wait [#allocation9], 3072  }
  0x5a   :  { %946 = vsyncadd [#allocation9], 4294964224  ;;  %v958_v0 = vmov 0.0   ;;  %vm959_vm0 = vmmov 0   ;;  %v751_v1 = vld [vmem:[#allocation5] sm:$0xff]   ;;  %v752_v2 = vld [vmem:[#allocation5 + $0x8] sm:$0xff]   ;;  %v189_v49 = vlaneseq }
  0x5b   :  { %710 = vmatprep.subr.bf16.mxu0 %v958_v0  ;;  %714 = vmatprep.mubr.msk.bf16.mxu0 %vm959_vm0, %v958_v0  ;;  %v100_v3 = vld [vmem:[#allocation2] sm:$0xff]  ;;  %v756_v6 = vld [vmem:[#allocation7 + $0x14] ss:$8 sps:$4 sm:$0xff]   ;;  %vm125_vm1 = vcmask 261120   ;;  %v758_v8 = vld [vmem:[#allocation7 + $0x10] ss:$8 sps:$4 sm:$0xff]  }
  0x5c   :  { %711 = vmatpush3.bf16.msra.mxu0 %v751_v1  ;;  %v753_v4 = vld [vmem:[#allocation7 + $0x4] ss:$8 sps:$4 sm:$0xff]   ;;  %v755_v5 = vld [vmem:[#allocation7] ss:$8 sps:$4 sm:$0xff]   ;;  %v101_v7 = vpack.c.bf16 %v100_v3, %v100_v3  ;;  %v762_v11 = vld [vmem:[#allocation7 + $0x34] ss:$8 sps:$4 sm:$0xff]  }
  0x5d   :  { %712 = vmatprep.subr.bf16.mxu0 %v958_v0  ;;  %279 = vmatprep.subr.bf16.mxu1 %v753_v4  ;;  %v759_v9 = vld [vmem:[#allocation7 + $0x24] ss:$8 sps:$4 sm:$0xff]   ;;  %v761_v10 = vld [vmem:[#allocation7 + $0x20] ss:$8 sps:$4 sm:$0xff]   ;;  %v764_v12 = vld [vmem:[#allocation7 + $0x30] ss:$8 sps:$4 sm:$0xff]  }
  0x5e   :  { %280 = vmatpush1.bf16.msra.mxu1 %v755_v5  ;;  %v765_v13 = vld [vmem:[#allocation7 + $0x44] ss:$8 sps:$4 sm:$0xff]   ;;  %v767_v14 = vld [vmem:[#allocation7 + $0x40] ss:$8 sps:$4 sm:$0xff]   ;;  %v768_v15 = vld [vmem:[#allocation7 + $0x54] ss:$8 sps:$4 sm:$0xff]  }
  0x5f   :  { %281 = vmatprep.subr.bf16.mxu1 %v756_v6  ;;  %v770_v16 = vld [vmem:[#allocation7 + $0x50] ss:$8 sps:$4 sm:$0xff]   ;;  %v771_v17 = vld [vmem:[#allocation7 + $0x64] ss:$8 sps:$4 sm:$0xff]   ;;  %v773_v18 = vld [vmem:[#allocation7 + $0x60] ss:$8 sps:$4 sm:$0xff]  }
  0x60   :  { %713 = vmatpush3.bf16.msra.mxu0 %v752_v2  ;;  %v774_v19 = vld [vmem:[#allocation7 + $0x74] ss:$8 sps:$4 sm:$0xff]   ;;  %v776_v20 = vld [vmem:[#allocation7 + $0x70] ss:$8 sps:$4 sm:$0xff]   ;;  %v960_v21 = vmov 0   ;;  %v777_v22 = vld [vmem:[#allocation8 + $0x40] sm:$0xff]  }
  0x61   :  { %311 = vmatprep.mubr.bf16.mxu1 %v960_v21  ;;  %v778_v23 = vld [vmem:[#allocation8] sm:$0xff]   ;;  %v779_v24 = vld [vmem:[#allocation8 + $0x48] sm:$0xff]   ;;  %679 = vmatprep.subr.bf16.mxu0 %v777_v22  ;;  %v781_v26 = vld [vmem:[#allocation8 + $0x50] sm:$0xff]   ;;  %v190_v50 = vshrl.u32 %v189_v49, 7  ;;  %s961_s13 = smov [#allocation11]  }
  0x62   :  { %282 = vmatpush1.bf16.msra.mxu1 %v758_v8  ;;  %v780_v25 = vld [vmem:[#allocation8 + $0x8] sm:$0xff]   ;;  %v782_v27 = vld [vmem:[#allocation8 + $0x10] sm:$0xff]   ;;  %v783_v28 = vld [vmem:[#allocation8 + $0x58] sm:$0xff]   ;;  %s619_s1 = sshll.u32 %s961_s13, 4  ;;  %s620_s1 = int_to_ptr.vmem [resolvable:$true] %s619_s1 }
  0x63   :  { %715 = vmatmul.mubr.msk.bf16.vlgmr.msra.gmra.mrb[0].mxu0 %vm125_vm1, %v101_v7  ;;  %283 = vmatprep.subr.bf16.mxu1 %v759_v9  ;;  %v784_v29 = vld [vmem:[#allocation8 + $0x18] sm:$0xff]   ;;  %v630_v30 = vld [vmem:[%s1121_s2] ss:$0 sm:$0xff]  ;;  %v785_v38 = vld [vmem:[#allocation8 + $0x60] sm:$0xff]   ;;  %v191_v51 = vsub.s32 0, %v190_v50  ;;  %v195_v53 = vsub.s32 1, %v190_v50  ;;  %p924_p13 = scmp.lt.s32.totalorder %s620_s1, %s620_s1 }
  0x64   :  { %680 = vmatpush3.bf16.msra.mxu0 %v778_v23  ;;  %v786_v39 = vld [vmem:[#allocation8 + $0x20] sm:$0xff]   ;;  %v787_v40 = vld [vmem:[#allocation8 + $0x68] sm:$0xff]   ;;  %v789_v42 = vld [vmem:[#allocation8 + $0x70] sm:$0xff]  }
  0x65   :  { %681 = vmatprep.subr.bf16.mxu0 %v779_v24  ;;  %v788_v41 = vld [vmem:[#allocation8 + $0x28] sm:$0xff]   ;;  %v790_v43 = vld [vmem:[#allocation8 + $0x30] sm:$0xff]   ;;  %v791_v44 = vld [vmem:[#allocation8 + $0x78] sm:$0xff]  }
  0x66   :  { %284 = vmatpush1.bf16.msra.mxu1 %v761_v10  ;;  %v792_v45 = vld [vmem:[#allocation8 + $0x38] sm:$0xff]   ;;  %v793_v46 = vld [vmem:[#allocation10] sm:$0xff]   ;;  %v794_v47 = vld [vmem:[#allocation10 + $0x8] sm:$0xff]  }
  0x67   :  { %285 = vmatprep.subr.bf16.mxu1 %v762_v11  ;;  %v795_v48 = vld [vmem:[#allocation10 + $0x10] sm:$0xff]   ;;  %v187_v52 = vld [vmem:[%s1123_s4] sm:$0x3]  ;;  %v796_v3 = vld [vmem:[#allocation10 + $0x18] sm:$0xff]  }
  0x68   :  { %682 = vmatpush3.bf16.msra.mxu0 %v780_v25  ;;  %v192_v54 = vrot.slane %v187_v52, %v191_v51  ;;  %v196_v55 = vrot.slane %v187_v52, %v195_v53  ;;  %v797_v4 = vld [vmem:[#allocation10 + $0x20] sm:$0xff]   ;;  %v798_v5 = vld [vmem:[#allocation10 + $0x28] sm:$0xff]   ;;  %v799_v6 = vld [vmem:[#allocation10 + $0x30] sm:$0xff]  }
  0x69   :  { %683 = vmatprep.subr.bf16.mxu0 %v781_v26  ;;  %v800_v7 = vld [vmem:[#allocation10 + $0x38] sm:$0xff]   ;;  %v650_v9 = vld [vmem:[%s1125_s6] ss:$0 sm:$0xff]  ;;  %s919_s6 = scalar_lea.vmem %s620_s1, 128 }
  0x6a   :  { %286 = vmatpush1.bf16.msra.mxu1 %v764_v12  ;;  %p920_p12 = scmp.ne.s32.totalorder %s620_s1, %s919_s6  ;;  %p925_p0 = scmp.lt.s32.totalorder %s919_s6, %s919_s6 }
  0x6b   :  { %287 = vmatprep.subr.bf16.mxu1 %v765_v13 }
  0x6c   :  { %684 = vmatpush3.bf16.msra.mxu0 %v782_v27  ;;  %p926_p1 = por %p925_p0, %p924_p13 }
  0x6d   :  { %685 = vmatprep.subr.bf16.mxu0 %v783_v28 }
  0x6e   :  { %288 = vmatpush1.bf16.msra.mxu1 %v767_v14  ;;  %p927_p2 = pnand %p926_p1, %p920_p12 }
  0x6f   :  { %289 = vmatprep.subr.bf16.mxu1 %v768_v15 }
  0x70   :  { %686 = vmatpush3.bf16.msra.mxu0 %v784_v29 }
  0x71   :  { %687 = vmatprep.subr.bf16.mxu0 %v785_v38 }
  0x72   :  { %290 = vmatpush1.bf16.msra.mxu1 %v770_v16 }
  0x73   :  { %291 = vmatprep.subr.bf16.mxu1 %v771_v17 }
  0x74   :  { %688 = vmatpush3.bf16.msra.mxu0 %v786_v39 }
  0x75   :  { %689 = vmatprep.subr.bf16.mxu0 %v787_v40 }
  0x76   :  { %292 = vmatpush1.bf16.msra.mxu1 %v773_v18 }
  0x77   :  { %293 = vmatprep.subr.bf16.mxu1 %v774_v19 }
  0x78   :  { %690 = vmatpush3.bf16.msra.mxu0 %v788_v41 }
  0x79   :  { %691 = vmatprep.subr.bf16.mxu0 %v789_v42 }
  0x7a   :  { %294 = vmatpush1.bf16.msra.mxu1 %v776_v20 }
  0x7b   :  { %718 = vmatprep.subr.bf16.mxu1 %v958_v0 }
  0x7c   :  { %692 = vmatpush3.bf16.msra.mxu0 %v790_v43 }
  0x7d   :  { %693 = vmatprep.subr.bf16.mxu0 %v791_v44 }
  0x80   :  { %694 = vmatpush3.bf16.msra.mxu0 %v792_v45 }
 0x136   :  { %v163_v31 = vpop.f32.mrb[0].mxu0 }
 0x137   :  { %v164_v32 = vadd.f32 %v630_v30, %v163_v31  ;;  %v716_v33 = vpop.f32.mrb[1].mxu0 }
 0x138   :  { %v166_v34 = vpop.f32.mrb[2].mxu0 }
 0x139   :  { %801 = vtanh.f32 %v164_v32  ;;  %v717_v35 = vpop.f32.mrb[3].mxu0 }
 0x143   :  { %v802_v36 = vpop.eup %801 }
 0x144   :  { %v170_v37 = vpack.c.bf16 %v802_v36, %v802_v36 }
 0x146   :  { %312 = vmatmul.mubr.bf16.vlgmr.msra.gmra.mrb[0].mxu1 %v170_v37 }
 0x147   :  { %734 = vmatprep.mubr.msk.bf16.mxu1 %vm959_vm0, %v958_v0  ;;  %719 = vmatpush3.bf16.msra.mxu1 %v793_v46 }
 0x148   :  { %720 = vmatprep.subr.bf16.mxu1 %v958_v0 }
 0x14b   :  { %721 = vmatpush3.bf16.msra.mxu1 %v794_v47 }
 0x14c   :  { %722 = vmatprep.subr.bf16.mxu1 %v958_v0 }
 0x14f   :  { %723 = vmatpush3.bf16.msra.mxu1 %v795_v48 }
 0x150   :  { %724 = vmatprep.subr.bf16.mxu1 %v958_v0 }
 0x153   :  { %725 = vmatpush3.bf16.msra.mxu1 %v796_v3 }
 0x154   :  { %726 = vmatprep.subr.bf16.mxu1 %v958_v0 }
 0x157   :  { %727 = vmatpush3.bf16.msra.mxu1 %v797_v4 }
 0x158   :  { %728 = vmatprep.subr.bf16.mxu1 %v958_v0 }
 0x15b   :  { %729 = vmatpush3.bf16.msra.mxu1 %v798_v5 }
 0x15c   :  { %730 = vmatprep.subr.bf16.mxu1 %v958_v0 }
 0x15f   :  { %731 = vmatpush3.bf16.msra.mxu1 %v799_v6 }
 0x160   :  { %732 = vmatprep.subr.bf16.mxu1 %v958_v0  ;;  %v667_v0 = vld [vmem:[%s1127_s8] ss:$0 sm:$0xff] }
 0x163   :  { %733 = vmatpush3.bf16.msra.mxu1 %v800_v7 }
 0x219   :  { %v313_v56 = vpop.f32.mrb[0].mxu1 }
 0x21a   :  { %v314_v57 = vadd.f32 %v313_v56, %v192_v54  ;;  %v315_v58 = vpop.f32.mrb[1].mxu1 }
 0x21b   :  { %v316_v59 = vadd.f32 %v315_v58, %v196_v55  ;;  %v317_v60 = vpop.f32.mrb[2].mxu1 }
 0x21c   :  { %803 = vtanh.f32 %v314_v57  ;;  %v318_v61 = vpop.f32.mrb[3].mxu1 }
 0x21d   :  { %805 = vtanh.f32 %v316_v59 }
 0x226   :  { %v804_v62 = vpop.eup %803 }
 0x227   :  { %v806_v63 = vpop.eup %805  ;;  %v322_v2 = vpack.c.bf16 %v804_v62, %v804_v62 }
 0x228   :  { %v323_v1 = vpack.c.bf16 %v806_v63, %v806_v63 }
 0x22a   :  { %491 = vmatprep.mubr.bf16.mxu0 %v323_v1 }
 0x22b   :  { %492 = vmatmul.mubr.bf16.vlgmr.msra.gmra.mrb[4].mxu0 %v322_v2 }
 0x2fe   :  { %v695_v8 = vpop.f32.mrb[4].mxu0 }
 0x2ff   :  { %v696_v10 = vpop.f32.mrb[5].mxu0 }
 0x300   :  { %v697_v11 = vadd.f32 %v696_v10, %v695_v8  ;;  %v698_v12 = vpop.f32.mrb[6].mxu0 }
 0x301   :  { %v699_v13 = vpop.f32.mrb[7].mxu0 }
 0x302   :  { %v494_v14 = vadd.f32 %v697_v11, %v650_v9 }
 0x304   :  { %807 = vtanh.f32 %v494_v14 }
 0x30e   :  { %v808_v15 = vpop.eup %807 }
 0x30f   :  { %v500_v16 = vpack.c.bf16 %v808_v15, %v808_v15 }
 0x311   :  { %735 = vmatmul.mubr.bf16.vlgmr.msra.gmra.mrb[4].mxu1 %v500_v16 }
 0x3e4   :  { %v606_v17 = vpop.f32.mrb[4].mxu1 }
 0x3e5   :  { %v607_v18 = vadd.f32 %v667_v0, %v606_v17  ;;  %v736_v19 = vpop.f32.mrb[5].mxu1 }
 0x3e6   :  { %v609_v20 = vpop.f32.mrb[6].mxu1 }
 0x3e7   :  { %612 = vst [vmem:[#allocation11] sm:$0xff] %v607_v18  ;;  %v737_v21 = vpop.f32.mrb[7].mxu1 }
 0x3e8   :  { %930 = shalt.err (!%p927_p2)
}
 0x3e9   :  { %s931_s8 = scalar_lea.hbm %s1128_s9, 128 }
 0x3ea   :  { %p932_p3 = scmp.ne.s32.totalorder %s1128_s9, %s931_s8  ;;  %p935_p4 = scmp.lt.u32.totalorder %s931_s8, %s1128_s9 }
 0x3ec   :  { %p937_p5 = pnand %p935_p4, %p932_p3 }
 0x3ee   :  { %940 = shalt.err (!%p937_p5)
}
 0x3ef   :  { %622 = dma.vmem_to_hbm [thread:$0]  %s620_s1, 128, %s1128_s9, [#allocation4]  }
 0x3f0   :  { %947 = dma.done.wait [#allocation4], 128  }
 0x3f1   :  { %948 = vsyncadd [#allocation4], 4294967168 }
 0x3f2   :  { %626 = vsyncpa [#allocation3], 1 }
 0x3f3   :  { %627 = vsyncpa [#allocation6], 1 }
 0x3f4   :  { %628 = vsyncpa [#allocation9], 1 }
 0x3f5   :  { %629 = vsyncpa [#allocation4], 1 }

</bundles_post_ra>
